<compile_context>
chip_gen: v6e
topology: v6e:2x2x1
jax: 0.10.0
libtpu: 0.0.40
codegen_flags: <defaults>
</compile_context>

<pallas_src>
import jax
import jax.numpy as jnp
from jax.experimental import pallas as pl
from jax.experimental.pallas import tpu as pltpu


# ---------------------------------------------------------------------------
# Kernels
# ---------------------------------------------------------------------------

def _fwd_loss_kernel(x1_ref, x2_ref, t_ref, w1_ref, b1_ref, w2_ref, b2_ref,
                     o1_ref, o2_ref, lpart_ref):
    # layer1(input1) / layer2(input2): bf16 MXU matmuls, f32 accumulation.
    o1 = jnp.dot(x1_ref[...].astype(jnp.bfloat16), w1_ref[...],
                 preferred_element_type=jnp.float32) + b1_ref[...]
    o2 = jnp.dot(x2_ref[...].astype(jnp.bfloat16), w2_ref[...],
                 preferred_element_type=jnp.float32) + b2_ref[...]
    o1_ref[...] = o1
    o2_ref[...] = o2
    # Per-tile, lane-dense partial sum of squared error (f32).  Global mean
    # (divide by B*H) is completed outside the kernel so it stays correct
    # under batch tiling and keeps this grid axis "parallel".
    d = o1 + o2 - t_ref[...]
    lpart_ref[...] = jnp.sum(d * d, axis=0)[None, None, :]


def _fwd_no_loss_kernel(x1_ref, x2_ref, w1_ref, b1_ref, w2_ref, b2_ref,
                        o1_ref, o2_ref):
    o1_ref[...] = jnp.dot(x1_ref[...].astype(jnp.bfloat16), w1_ref[...],
                          preferred_element_type=jnp.float32) + b1_ref[...]
    o2_ref[...] = jnp.dot(x2_ref[...].astype(jnp.bfloat16), w2_ref[...],
                          preferred_element_type=jnp.float32) + b2_ref[...]


# ---------------------------------------------------------------------------
# Tiling helpers
# ---------------------------------------------------------------------------

_VMEM_BUDGET = 40 * 1024 * 1024   # headroom under v7x's 64 MiB / TC


def _pick_batch_tile(batch, row_bytes, resident_bytes):
    """Largest batch tile that divides `batch`, is a sublane multiple, keeps
    the double-buffered working set under the v7x-safe VMEM budget, and (when
    possible) leaves >= 2 grid steps so the pipeline actually overlaps."""
    best = None
    for tb in (1024, 512, 256, 128, 64, 32, 16, 8):
        if batch % tb != 0:
            continue
        if 2 * tb * row_bytes + resident_bytes > _VMEM_BUDGET:
            continue
        if best is None:
            best = tb
        if batch // tb >= 2:
            return tb
    return best if best is not None else batch   # tiny/odd batch: one block


# ---------------------------------------------------------------------------
# Model
# ---------------------------------------------------------------------------

class PallasModel:
    """Concrete realization of the AllenNLP Model forward-pass sketch."""

    def __init__(self, in1: int, in2: int, hidden: int, key):
        k1, k2, k3, k4 = jax.random.split(key, 4)
        # deterministic synthetic parameters; weights shipped as bf16 (MXU dtype)
        self.w1 = (jax.random.normal(k1, (in1, hidden), jnp.float32)
                   / jnp.sqrt(in1)).astype(jnp.bfloat16)
        self.b1 = jax.random.normal(k2, (1, hidden), jnp.float32) * 0.01
        self.w2 = (jax.random.normal(k3, (in2, hidden), jnp.float32)
                   / jnp.sqrt(in2)).astype(jnp.bfloat16)
        self.b2 = jax.random.normal(k4, (1, hidden), jnp.float32) * 0.01
        self.hidden = hidden

    def forward(self, input1, input2, targets=None):
        batch, d1 = input1.shape
        d2 = input2.shape[1]
        h = self.hidden
        with_loss = targets is not None

        # ---- tile plan (VMEM budget derived for v7x's 64 MiB / TC) ----------
        n_tiled_feats = d1 + d2 + 2 * h + (h if with_loss else 0)
        row_bytes = n_tiled_feats * 4                       # f32 activations
        resident = 2 * (self.w1.nbytes + self.w2.nbytes     # double-buffered
                        + self.b1.nbytes + self.b2.nbytes)  # params
        tb = _pick_batch_tile(batch, row_bytes, resident)
        if batch % tb != 0:
            tb = batch
        n_tiles = batch // tb
        grid = (n_tiles,)

        # ---- BlockSpecs ------------------------------------------------------
        x1_spec = pl.BlockSpec((tb, d1), lambda i: (i, 0))
        x2_spec = pl.BlockSpec((tb, d2), lambda i: (i, 0))
        t_spec = pl.BlockSpec((tb, h), lambda i: (i, 0))
        # constant index_map -> weights/biases fetched once, resident across grid
        w1_spec = pl.BlockSpec((d1, h), lambda i: (0, 0))
        w2_spec = pl.BlockSpec((d2, h), lambda i: (0, 0))
        b_spec = pl.BlockSpec((1, h), lambda i: (0, 0))
        o_spec = pl.BlockSpec((tb, h), lambda i: (i, 0))

        out_act = jax.ShapeDtypeStruct((batch, h), jnp.float32)

        est_vmem = 2 * tb * row_bytes + resident
        cp_kwargs = {"dimension_semantics": ("parallel",)}
        if est_vmem > 32 * 1024 * 1024:
            cp_kwargs["vmem_limit_bytes"] = min(int(est_vmem * 1.2),
                                                60 * 1024 * 1024)
        compiler_params = pltpu.CompilerParams(**cp_kwargs)

        flops = 2 * batch * (d1 + d2) * h + 4 * batch * h

        if with_loss:
            loss_spec = pl.BlockSpec((1, 1, h), lambda i: (i, 0, 0))
            bytes_accessed = (input1.nbytes + input2.nbytes + targets.nbytes
                              + self.w1.nbytes + self.w2.nbytes
                              + self.b1.nbytes + self.b2.nbytes
                              + 2 * batch * h * 4 + n_tiles * h * 4)
            o1, o2, lparts = pl.pallas_call(
                _fwd_loss_kernel,
                grid=grid,
                in_specs=[x1_spec, x2_spec, t_spec,
                          w1_spec, b_spec, w2_spec, b_spec],
                out_specs=(o_spec, o_spec, loss_spec),
                out_shape=(out_act, out_act,
                           jax.ShapeDtypeStruct((n_tiles, 1, h), jnp.float32)),
                compiler_params=compiler_params,
                cost_estimate=pl.CostEstimate(flops=flops, transcendentals=0,
                                              bytes_accessed=bytes_accessed),
            )(input1, input2, targets, self.w1, self.b1, self.w2, self.b2)
            # finalize the mean outside the kernel (correct across batch tiles)
            loss = jnp.sum(lparts) / float(batch * h)
            return {"output1": o1, "output2": o2, "loss": loss}
        else:
            bytes_accessed = (input1.nbytes + input2.nbytes
                              + self.w1.nbytes + self.w2.nbytes
                              + self.b1.nbytes + self.b2.nbytes
                              + 2 * batch * h * 4)
            o1, o2 = pl.pallas_call(
                _fwd_no_loss_kernel,
                grid=grid,
                in_specs=[x1_spec, x2_spec, w1_spec, b_spec, w2_spec, b_spec],
                out_specs=(o_spec, o_spec),
                out_shape=(out_act, out_act),
                compiler_params=compiler_params,
                cost_estimate=pl.CostEstimate(flops=flops, transcendentals=0,
                                              bytes_accessed=bytes_accessed),
            )(input1, input2, self.w1, self.b1, self.w2, self.b2)
            return {"output1": o1, "output2": o2}


# ---------------------------------------------------------------------------
# Reference + test
# ---------------------------------------------------------------------------

def _reference_forward(model, x1, x2, targets):
    w1 = model.w1.astype(jnp.float32)
    w2 = model.w2.astype(jnp.float32)
    x1b = x1.astype(jnp.bfloat16).astype(jnp.float32)
    x2b = x2.astype(jnp.bfloat16).astype(jnp.float32)
    o1 = x1b @ w1 + model.b1
    o2 = x2b @ w2 + model.b2
    loss = jnp.mean((o1 + o2 - targets) ** 2)
    return o1, o2, loss


if __name__ == "__main__":
    key = jax.random.PRNGKey(0)
    k_model, k_x1, k_x2, k_t = jax.random.split(key, 4)

    # small shapes; batch=256 -> TB=128, grid=(2,) exercises the tiled path
    batch, in1, in2, hidden = 256, 32, 32, 128
    model = PallasModel(in1, in2, hidden, k_model)

    x1 = jax.random.normal(k_x1, (batch, in1), jnp.float32)
    x2 = jax.random.normal(k_x2, (batch, in2), jnp.float32)
    targets = jax.random.normal(k_t, (batch, hidden), jnp.float32)

    out = model.forward(x1, x2, targets)
    jax.block_until_ready(out)

    ref_o1, ref_o2, ref_loss = _reference_forward(model, x1, x2, targets)
    assert jnp.allclose(out["output1"], ref_o1, atol=1e-3, rtol=1e-3)
    assert jnp.allclose(out["output2"], ref_o2, atol=1e-3, rtol=1e-3)
    assert jnp.allclose(out["loss"], ref_loss, atol=1e-3, rtol=1e-3)

    # inference-time path (no targets / no loss key), matching the docstring
    out_infer = model.forward(x1, x2)
    jax.block_until_ready(out_infer)
    assert "loss" not in out_infer
    assert jnp.allclose(out_infer["output1"], ref_o1, atol=1e-3, rtol=1e-3)
    assert jnp.allclose(out_infer["output2"], ref_o2, atol=1e-3, rtol=1e-3)

    print("KERNEL_OK")
</pallas_src>

<mosaic_0001>
module attributes {stable_mosaic.version = 11 : i64} {
  func.func @_fwd_loss_kernel(%arg0: i32, %arg1: memref<128x32xf32, #tpu.memory_space<vmem>>, %arg2: memref<128x32xf32, #tpu.memory_space<vmem>>, %arg3: memref<128x128xf32, #tpu.memory_space<vmem>>, %arg4: memref<32x128xbf16, #tpu.memory_space<vmem>>, %arg5: memref<1x128xf32, #tpu.memory_space<vmem>>, %arg6: memref<32x128xbf16, #tpu.memory_space<vmem>>, %arg7: memref<1x128xf32, #tpu.memory_space<vmem>>, %arg8: memref<128x128xf32, #tpu.memory_space<vmem>>, %arg9: memref<128x128xf32, #tpu.memory_space<vmem>>, %arg10: memref<1x1x128xf32, #tpu.memory_space<vmem>>) attributes {dimension_semantics = [#tpu.dimension_semantics<parallel>], iteration_bounds = array<i64: 2>, scalar_prefetch = 0 : i64, scratch_operands = 0 : i64, tpu.core_type = #tpu.core_type<tc>, window_params = [{transform_indices = @transform_0, window_bounds = array<i64: 128, 32>}, {transform_indices = @transform_1, window_bounds = array<i64: 128, 32>}, {transform_indices = @transform_2, window_bounds = array<i64: 128, 128>}, {pipeline_mode = #tpu.pipeline_mode<synchronous>, transform_indices = @transform_3, window_bounds = array<i64: 32, 128>}, {pipeline_mode = #tpu.pipeline_mode<synchronous>, transform_indices = @transform_4, window_bounds = array<i64: 1, 128>}, {pipeline_mode = #tpu.pipeline_mode<synchronous>, transform_indices = @transform_5, window_bounds = array<i64: 32, 128>}, {pipeline_mode = #tpu.pipeline_mode<synchronous>, transform_indices = @transform_6, window_bounds = array<i64: 1, 128>}, {transform_indices = @transform_7, window_bounds = array<i64: 128, 128>}, {transform_indices = @transform_8, window_bounds = array<i64: 128, 128>}, {transform_indices = @transform_9, window_bounds = array<i64: 1, 1, 128>}]} {
    %c0 = arith.constant 0 : index
    %c0_0 = arith.constant 0 : index
    %0 = vector.load %arg1[%c0, %c0_0] : memref<128x32xf32, #tpu.memory_space<vmem>>, vector<128x32xf32>
    %1 = arith.truncf %0 : vector<128x32xf32> to vector<128x32xbf16>
    %c0_1 = arith.constant 0 : index
    %c0_2 = arith.constant 0 : index
    %2 = vector.load %arg4[%c0_1, %c0_2] : memref<32x128xbf16, #tpu.memory_space<vmem>>, vector<32x128xbf16>
    %cst = arith.constant dense<0.000000e+00> : vector<128x128xf32>
    %3 = tpu.matmul %1, %2, %cst {dimension_numbers = #tpu.dot_dimension_numbers<[1], [0], [0], [1], [0, 0, 1, 1], [], []>} : vector<128x32xbf16>, vector<32x128xbf16>, vector<128x128xf32> -> vector<128x128xf32>
    %c0_3 = arith.constant 0 : index
    %c0_4 = arith.constant 0 : index
    %4 = vector.load %arg5[%c0_3, %c0_4] : memref<1x128xf32, #tpu.memory_space<vmem>>, vector<1x128xf32>
    %5 = vector.broadcast %4 : vector<1x128xf32> to vector<128x128xf32>
    %6 = arith.addf %3, %5 : vector<128x128xf32>
    %c0_5 = arith.constant 0 : index
    %c0_6 = arith.constant 0 : index
    %7 = vector.load %arg2[%c0_5, %c0_6] : memref<128x32xf32, #tpu.memory_space<vmem>>, vector<128x32xf32>
    %8 = arith.truncf %7 : vector<128x32xf32> to vector<128x32xbf16>
    %c0_7 = arith.constant 0 : index
    %c0_8 = arith.constant 0 : index
    %9 = vector.load %arg6[%c0_7, %c0_8] : memref<32x128xbf16, #tpu.memory_space<vmem>>, vector<32x128xbf16>
    %cst_9 = arith.constant dense<0.000000e+00> : vector<128x128xf32>
    %10 = tpu.matmul %8, %9, %cst_9 {dimension_numbers = #tpu.dot_dimension_numbers<[1], [0], [0], [1], [0, 0, 1, 1], [], []>} : vector<128x32xbf16>, vector<32x128xbf16>, vector<128x128xf32> -> vector<128x128xf32>
    %c0_10 = arith.constant 0 : index
    %c0_11 = arith.constant 0 : index
    %11 = vector.load %arg7[%c0_10, %c0_11] : memref<1x128xf32, #tpu.memory_space<vmem>>, vector<1x128xf32>
    %12 = vector.broadcast %11 : vector<1x128xf32> to vector<128x128xf32>
    %13 = arith.addf %10, %12 : vector<128x128xf32>
    %c0_12 = arith.constant 0 : index
    %c0_13 = arith.constant 0 : index
    %14 = vector.load %arg8[%c0_12, %c0_13] : memref<128x128xf32, #tpu.memory_space<vmem>>, vector<128x128xf32>
    tpu.vector_store %arg8[%c0_12, %c0_13], %6 {strides = array<i32>} : memref<128x128xf32, #tpu.memory_space<vmem>>, vector<128x128xf32>,
    %c0_14 = arith.constant 0 : index
    %c0_15 = arith.constant 0 : index
    %15 = vector.load %arg9[%c0_14, %c0_15] : memref<128x128xf32, #tpu.memory_space<vmem>>, vector<128x128xf32>
    tpu.vector_store %arg9[%c0_14, %c0_15], %13 {strides = array<i32>} : memref<128x128xf32, #tpu.memory_space<vmem>>, vector<128x128xf32>,
    %16 = arith.addf %6, %13 : vector<128x128xf32>
    %c0_16 = arith.constant 0 : index
    %c0_17 = arith.constant 0 : index
    %17 = vector.load %arg3[%c0_16, %c0_17] : memref<128x128xf32, #tpu.memory_space<vmem>>, vector<128x128xf32>
    %18 = arith.subf %16, %17 : vector<128x128xf32>
    %19 = arith.mulf %18, %18 : vector<128x128xf32>
    %cst_18 = arith.constant dense<0.000000e+00> : vector<128xf32>
    %20 = vector.multi_reduction <add>, %19, %cst_18 [0] : vector<128x128xf32> to vector<128xf32>
    %21 = vector.shape_cast %20 : vector<128xf32> to vector<1x1x128xf32>
    %c0_19 = arith.constant 0 : index
    %c0_20 = arith.constant 0 : index
    %c0_21 = arith.constant 0 : index
    %22 = vector.load %arg10[%c0_19, %c0_20, %c0_21] : memref<1x1x128xf32, #tpu.memory_space<vmem>>, vector<1x1x128xf32>
    tpu.vector_store %arg10[%c0_19, %c0_20, %c0_21], %21 {strides = array<i32>} : memref<1x1x128xf32, #tpu.memory_space<vmem>>, vector<1x1x128xf32>,
    return
  }
  func.func @transform_0(%arg0: i32) -> (i32, i32) {
    %c0_i32 = arith.constant 0 : i32
    %c0_i32_0 = arith.constant 0 : i32
    return %arg0, %c0_i32 : i32, i32
  }
  func.func @transform_1(%arg0: i32) -> (i32, i32) {
    %c0_i32 = arith.constant 0 : i32
    %c0_i32_0 = arith.constant 0 : i32
    return %arg0, %c0_i32 : i32, i32
  }
  func.func @transform_2(%arg0: i32) -> (i32, i32) {
    %c0_i32 = arith.constant 0 : i32
    %c0_i32_0 = arith.constant 0 : i32
    return %arg0, %c0_i32 : i32, i32
  }
  func.func @transform_3(%arg0: i32) -> (i32, i32) {
    %c0_i32 = arith.constant 0 : i32
    %c0_i32_0 = arith.constant 0 : i32
    %c0_i32_1 = arith.constant 0 : i32
    return %c0_i32, %c0_i32_0 : i32, i32
  }
  func.func @transform_4(%arg0: i32) -> (i32, i32) {
    %c0_i32 = arith.constant 0 : i32
    %c0_i32_0 = arith.constant 0 : i32
    %c0_i32_1 = arith.constant 0 : i32
    return %c0_i32, %c0_i32_0 : i32, i32
  }
  func.func @transform_5(%arg0: i32) -> (i32, i32) {
    %c0_i32 = arith.constant 0 : i32
    %c0_i32_0 = arith.constant 0 : i32
    %c0_i32_1 = arith.constant 0 : i32
    return %c0_i32, %c0_i32_0 : i32, i32
  }
  func.func @transform_6(%arg0: i32) -> (i32, i32) {
    %c0_i32 = arith.constant 0 : i32
    %c0_i32_0 = arith.constant 0 : i32
    %c0_i32_1 = arith.constant 0 : i32
    return %c0_i32, %c0_i32_0 : i32, i32
  }
  func.func @transform_7(%arg0: i32) -> (i32, i32) {
    %c0_i32 = arith.constant 0 : i32
    %c0_i32_0 = arith.constant 0 : i32
    return %arg0, %c0_i32 : i32, i32
  }
  func.func @transform_8(%arg0: i32) -> (i32, i32) {
    %c0_i32 = arith.constant 0 : i32
    %c0_i32_0 = arith.constant 0 : i32
    return %arg0, %c0_i32 : i32, i32
  }
  func.func @transform_9(%arg0: i32) -> (i32, i32, i32) {
    %c0_i32 = arith.constant 0 : i32
    %c0_i32_0 = arith.constant 0 : i32
    %c0_i32_1 = arith.constant 0 : i32
    return %arg0, %c0_i32, %c0_i32_0 : i32, i32, i32
  }
}

</mosaic_0001>

<bundles_post_ra>
// kernel: tpu_custom_call.1
= control target key start
LH: loop header
LB: loop body
LE: loop exit
PB: predicated region body
PF: predicated region fallthrough
CT: control target
= control target key end

     0   :  { %s1732_s0 = inlined_call_operand.vmem [shape: f32[256,32], index: 0, kind: input, shape index: {}]   ;;  %s1733_s1 = inlined_call_operand.vmem [shape: f32[256,32], index: 1, kind: input, shape index: {}]   ;;  %s1734_s2 = inlined_call_operand.vmem [shape: f32[256,128], index: 2, kind: input, shape index: {}]   ;;  %s1735_s3 = inlined_call_operand.vmem [shape: bf16[32,128], index: 3, kind: input, shape index: {}]   ;;  %s1736_s4 = inlined_call_operand.vmem [shape: f32[1,128], index: 4, kind: input, shape index: {}]   ;;  %s1737_s5 = inlined_call_operand.vmem [shape: bf16[32,128], index: 5, kind: input, shape index: {}]   ;;  %s1738_s6 = inlined_call_operand.vmem [shape: f32[1,128], index: 6, kind: input, shape index: {}]   ;;  %s1739_s7 = inlined_call_operand.hbm [shape: f32[256,128], index: 7, kind: output, shape index: {0}]   ;;  %s1740_s8 = inlined_call_operand.hbm [shape: f32[256,128], index: 8, kind: output, shape index: {1}]   ;;  %s1741_s9 = inlined_call_operand.hbm [shape: f32[2,1,128], index: 9, kind: output, shape index: {2}]  }
   0x1   :  { %1743 = sst [smem:[#allocation9_spill]] %s1732_s0 }
   0x2   :  { %1744 = sst [smem:[#allocation10_spill]] %s1733_s1 }
   0x3   :  { %1745 = sst [smem:[#allocation11_spill]] %s1734_s2 }
   0x4   :  { %1746 = sst [smem:[#allocation12_spill]] %s1735_s3 }
   0x5   :  { %15 = vsyncpa [#allocation3], 0 }
   0x6   :  { %17 = vsyncpa [#allocation3 + $0x1], 0 }
   0x7   :  { %18 = vsyncpa [#allocation5], 0 }
   0x8   :  { %20 = vsyncpa [#allocation5 + $0x1], 0  ;;  %s1380_s30 = smov 0   ;;  %s1382_s10 = smov 0  }
   0x9   :  { %s1384_s11 = smov 0   ;;  %s1386_s12 = smov 0  }
   0xa LB: > { %s1401_s13 = sadd.s32 4294967295, %s1323_s12   ;;  %s1742_s14 = sadd.s32 4294967294, %s1323_s12   ;;  %s1323_s12 = sphi %s1386_s12, %s1759_s12   ;;  %s1319_s11 = sphi %s1384_s11, %s1758_s11   ;;  %s1315_s10 = sphi %s1382_s10, %s1757_s10   ;;  %s1311_s30 = sphi %s1380_s30, %s1756_s30  }
   0xb   : > { %s1405_s15 = sadd.s32 1, %s1323_s12   ;;  %s195_s16 = sadd.s32 1, %s1319_s11 }
   0xc   : > { %s192_s17 = ssub.s32 %s1323_s12, %s1405_s15  ;;  %p205_p0 = scmp.ne.s32.totalorder %s1319_s11, %s1315_s10 }
   0xd   : > { %p193_p1 = scmp.eq.s32.totalorder %s192_s17, 0  ;;  %p206_p2 = scmp.eq.s32.totalorder %s1401_s13, 1 }
   0xe   : > { %p211_p3 = scmp.ne.s32.totalorder %s1315_s10, %s1311_s30  ;;  %p212_p4 = scmp.eq.s32.totalorder %s1742_s14, 1 }
   0xf   : > { %s1418_s18 = scalar_select %p193_p1, %s1319_s11, %s195_s16  }
  0x10   : > { %p1420_p5 = por %p206_p2, %p205_p0  ;;  %p1424_p6 = por %p212_p4, %p211_p3 }
  0x11   : > { %p1050_p7 = scmp.ge.s32.totalorder %s1323_s12, 1  ;;  %p321_p8 = scmp.lt.s32.totalorder %s1323_s12, 3 }
  0x13   : > { %p322_p9 = pnand %p1050_p7, %p321_p8 }
  0x14   : > { %s1749_s3 = sld [smem:[#allocation12_spill]] (!%p322_p9)  ;;  %s1434_s23 = sshll.u32 (!%p322_p9), %s1401_s13, 4 }
  0x15   : > { %325 = sbr.rel (%p322_p9) target bundleno = 332 (0x14c), region = 48  ;;  %p377_p10 = scmp.lt.s32.totalorder (!%p322_p9), %s1434_s23, 31 }
  0x16   : > { %s1750_s0 = sld [smem:[#allocation9_spill]] (!%p322_p9)  ;;  %s1510_s28 = sand.u32 (!%p322_p9), 1, %s1315_s10  }
  0x17   : > { %s1751_s1 = sld [smem:[#allocation10_spill]] (!%p322_p9)  ;;  %s1051_s29 = sshll.u32 (!%p322_p9), %s1510_s28, 7 }
  0x18   : > { %s1525_s25 = scalar_lea.vmem (!%p322_p9), [#allocation2], %s1051_s29  ;;  %s1529_s26 = scalar_lea.vmem (!%p322_p9), [#allocation4], %s1051_s29 }
  0x19   : > { %s1752_s2 = sld [smem:[#allocation11_spill]] (!%p322_p9)  ;;  %s1090_s29 = sshll.u32 (!%p322_p9), %s1401_s13, 11 }
  0x1a   : > { %v1203_v0 = vld [vmem:[%s1749_s3 + $0x8] sm:$0xff]   ;;  %v1205_v2 = vld [vmem:[%s1749_s3] sm:$0xff]   ;;  %s378_s16 = scalar_select %p377_p10, %s1434_s23, 31  ;;  %vm444_vm0 = vcmask 261120  }
  0x1b   : > { %v1204_v1 = vld [vmem:[%s1737_s5 + $0x8] sm:$0xff]   ;;  %1112 = vmatprep.subr.bf16.mxu0 %v1203_v0  ;;  %v1206_v3 = vld [vmem:[%s1737_s5] sm:$0xff]   ;;  %s875_s22 = sshll.u32 %s1525_s25, 4  ;;  %s1613_s14 = scalar_lea.hbm %s1739_s7, %s1090_s29  ;;  %s1615_s22 = int_to_ptr.vmem [resolvable:$true] %s875_s22 }
  0x1c   : > { %1132 = vmatprep.subr.bf16.mxu1 %v1204_v1  ;;  %1113 = vmatpush3.bf16.msra.mxu0 %v1203_v0  ;;  %s1447_s17 = sshll.u32 %s378_s16, 3  ;;  %v1516_v52 = vld [vmem:[%s1736_s4] ss:$0 sm:$0xff]  ;;  %s1207_s16 = scalar_lea.vmem %s1615_s22, 2048 }
  0x1d   : > { %1133 = vmatpush3.bf16.msra.mxu1 %v1204_v1  ;;  %1114 = vmatprep.subr.bf16.mxu0 %v1205_v2  ;;  %s1453_s24 = scalar_lea.vmem %s1750_s0, %s1447_s17  ;;  %s1459_s27 = scalar_lea.vmem %s1751_s1, %s1447_s17  ;;  %v1521_v53 = vld [vmem:[%s1738_s6] ss:$0 sm:$0xff] }
  0x1e   : > { %1134 = vmatprep.subr.bf16.mxu1 %v1206_v3  ;;  %v397_v4 = vld [vmem:[%s1453_s24] sm:$0xff]  ;;  %v398_v5 = vld [vmem:[%s1453_s24 + $0x8] sm:$0xff]  ;;  %v399_v9 = vld [vmem:[%s1453_s24 + $0x10] sm:$0xff]  ;;  %s1622_s1 = scalar_lea.hbm %s1740_s8, %s1090_s29  ;;  %p1208_p11 = scmp.ne.s32.totalorder %s1615_s22, %s1207_s16 }
  0x1f   : > { %v566_v6 = vld [vmem:[%s1459_s27] sm:$0xff]  ;;  %v413_v7 = vpack.c.bf16 %v398_v5, %v397_v4  ;;  %v567_v8 = vld [vmem:[%s1459_s27 + $0x8] sm:$0xff]  ;;  %v400_v10 = vld [vmem:[%s1453_s24 + $0x18] sm:$0xff]  ;;  %s1537_s21 = scalar_lea.vmem %s1752_s2, %s1447_s17  ;;  %s1325_s0 = smov [#allocation2]  }
  0x20   : > { %1115 = vmatpush3.bf16.msra.mxu0 %v1205_v2  ;;  %v582_v11 = vpack.c.bf16 %v567_v8, %v566_v6  ;;  %v414_v12 = vpack.c.bf16 %v400_v10, %v399_v9  ;;  %v568_v13 = vld [vmem:[%s1459_s27 + $0x10] sm:$0xff]  ;;  %v569_v14 = vld [vmem:[%s1459_s27 + $0x18] sm:$0xff]  ;;  %v401_v15 = vld [vmem:[%s1453_s24 + $0x20] sm:$0xff]  ;;  %p1209_p12 = pnand %p1208_p11, %p1420_p5  ;;  %s1211_s17 = sshll.u32 %s1325_s0, 4  ;;  %s1212_s17 = int_to_ptr.vmem [resolvable:$false] %s1211_s17 }
  0x21   : > { %1135 = vmatpush3.bf16.msra.mxu1 %v1206_v3  ;;  %1116 = vmatprep.mubr.msk.bf16.mxu0 %vm444_vm0, %v413_v7  ;;  %v583_v16 = vpack.c.bf16 %v569_v14, %v568_v13  ;;  %v402_v17 = vld [vmem:[%s1453_s24 + $0x28] sm:$0xff]  ;;  %v570_v18 = vld [vmem:[%s1459_s27 + $0x20] sm:$0xff]  ;;  %v403_v22 = vld [vmem:[%s1453_s24 + $0x30] sm:$0xff]  ;;  %s1213_s29 = scalar_lea.vmem %s1212_s17, 4096  ;;  %p1214_p0 = scmp.lt.s32.totalorder %s1615_s22, %s1212_s17 }
  0x22   : > { %v571_v19 = vld [vmem:[%s1459_s27 + $0x28] sm:$0xff]  ;;  %1136 = vmatprep.mubr.msk.bf16.mxu1 %vm444_vm0, %v582_v11  ;;  %v415_v20 = vpack.c.bf16 %v402_v17, %v401_v15  ;;  %v404_v23 = vld [vmem:[%s1453_s24 + $0x38] sm:$0xff]  ;;  %v572_v24 = vld [vmem:[%s1459_s27 + $0x30] sm:$0xff]  ;;  %p1210_p13 = pneg %p1209_p12  ;;  %p1215_p1 = scmp.lt.s32.totalorder %s1213_s29, %s1207_s16 }
  0x23   : > { %1117 = vmatmul.mubr.msk.bf16.vlgmr.msra.gmra.mxu0 %vm444_vm0, %v414_v12  ;;  %v584_v21 = vpack.c.bf16 %v571_v19, %v570_v18  ;;  %v573_v25 = vld [vmem:[%s1459_s27 + $0x38] sm:$0xff]  ;;  %v405_v26 = vld [vmem:[%s1453_s24 + $0x40] sm:$0xff]  ;;  %v406_v27 = vld [vmem:[%s1453_s24 + $0x48] sm:$0xff]  ;;  %v416_v30 = vpack.c.bf16 %v404_v23, %v403_v22 }
  0x24   : > { %1137 = vmatmul.mubr.msk.bf16.vlgmr.msra.gmra.mxu1 %vm444_vm0, %v583_v16  ;;  %1120 = vmatprep.mubr.msk.bf16.mxu0 %vm444_vm0, %v415_v20  ;;  %v574_v28 = vld [vmem:[%s1459_s27 + $0x40] sm:$0xff]  ;;  %v575_v29 = vld [vmem:[%s1459_s27 + $0x48] sm:$0xff]  ;;  %v585_v31 = vpack.c.bf16 %v573_v25, %v572_v24  ;;  %v417_v32 = vpack.c.bf16 %v406_v27, %v405_v26  ;;  %v407_v34 = vld [vmem:[%s1453_s24 + $0x50] sm:$0xff]  ;;  %p1216_p2 = por %p1215_p1, %p1214_p0 }
  0x25   : > { %1140 = vmatprep.mubr.msk.bf16.mxu1 %vm444_vm0, %v584_v21  ;;  %v586_v33 = vpack.c.bf16 %v575_v29, %v574_v28  ;;  %v408_v35 = vld [vmem:[%s1453_s24 + $0x58] sm:$0xff]  ;;  %v576_v36 = vld [vmem:[%s1459_s27 + $0x50] sm:$0xff]  ;;  %v409_v38 = vld [vmem:[%s1453_s24 + $0x60] sm:$0xff] }
  0x26   : > { %v577_v37 = vld [vmem:[%s1459_s27 + $0x58] sm:$0xff]  ;;  %v410_v39 = vld [vmem:[%s1453_s24 + $0x68] sm:$0xff]  ;;  %v578_v40 = vld [vmem:[%s1459_s27 + $0x60] sm:$0xff]  ;;  %v418_v42 = vpack.c.bf16 %v408_v35, %v407_v34  ;;  %p1217_p3 = pnand %p1216_p2, %p1210_p13 }
  0x27   : > { %v579_v41 = vld [vmem:[%s1459_s27 + $0x68] sm:$0xff]  ;;  %v587_v43 = vpack.c.bf16 %v577_v37, %v576_v36  ;;  %v419_v44 = vpack.c.bf16 %v410_v39, %v409_v38  ;;  %v411_v46 = vld [vmem:[%s1453_s24 + $0x70] sm:$0xff]  ;;  %v412_v47 = vld [vmem:[%s1453_s24 + $0x78] sm:$0xff]  ;;  %s891_s24 = sshll.u32 %s1529_s26, 4  ;;  %s1624_s24 = int_to_ptr.vmem [resolvable:$true] %s891_s24 }
  0x28   : > { %v588_v45 = vpack.c.bf16 %v579_v41, %v578_v40  ;;  %v580_v48 = vld [vmem:[%s1459_s27 + $0x70] sm:$0xff]  ;;  %v581_v49 = vld [vmem:[%s1459_s27 + $0x78] sm:$0xff]  ;;  %v420_v50 = vpack.c.bf16 %v412_v47, %v411_v46  ;;  %v782_v2 = vld [vmem:[%s1537_s21] sm:$0xff] }
  0x29   : > { %v589_v51 = vpack.c.bf16 %v581_v49, %v580_v48  ;;  %v784_v10 = vld [vmem:[%s1537_s21 + $0x10] sm:$0xff]  ;;  %v783_v12 = vld [vmem:[%s1537_s21 + $0x8] sm:$0xff]  ;;  %v785_v19 = vld [vmem:[%s1537_s21 + $0x18] sm:$0xff] }
  0x2a   : > { %v786_v27 = vld [vmem:[%s1537_s21 + $0x20] sm:$0xff]  ;;  %v787_v48 = vld [vmem:[%s1537_s21 + $0x28] sm:$0xff] }
  0x2b   : > { %1121 = vmatmul.mubr.msk.bf16.gmra.mxu0 %vm444_vm0, %v416_v30 }
  0x2c   : > { %1141 = vmatmul.mubr.msk.bf16.gmra.mxu1 %vm444_vm0, %v585_v31  ;;  %1124 = vmatprep.mubr.msk.bf16.mxu0 %vm444_vm0, %v417_v32 }
  0x2d   : > { %1144 = vmatprep.mubr.msk.bf16.mxu1 %vm444_vm0, %v586_v33 }
  0x33   : > { %1125 = vmatmul.mubr.msk.bf16.gmra.mxu0 %vm444_vm0, %v418_v42  ;;  %v788_v42 = vld [vmem:[%s1537_s21 + $0x30] sm:$0xff] }
  0x34   : > { %1145 = vmatmul.mubr.msk.bf16.gmra.mxu1 %vm444_vm0, %v587_v43  ;;  %1128 = vmatprep.mubr.msk.bf16.mxu0 %vm444_vm0, %v419_v44 }
  0x35   : > { %1148 = vmatprep.mubr.msk.bf16.mxu1 %vm444_vm0, %v588_v45 }
  0x3b   : > { %1129 = vmatmul.mubr.msk.bf16.gmra.mxu0 %vm444_vm0, %v420_v50 }
  0x3c   : > { %1149 = vmatmul.mubr.msk.bf16.gmra.mxu1 %vm444_vm0, %v589_v51 }
  0xe3   : > { %v1118_v54 = vpop.f32.mrf.mxu0 }
  0xe4   : > { %v512_v55 = vadd.f32 %v1118_v54, %v1516_v52  ;;  %v1138_v56 = vpop.f32.mrf.mxu1 }
  0xe5   : > { %v680_v57 = vadd.f32 %v1138_v56, %v1521_v53  ;;  %v503_v58 = vpop.f32.mrf.mxu0 }
  0xe6   : > { %736 = vst [vmem:[%s1525_s25 + $0x10] sm:$0xff] %v512_v55  ;;  %v504_v59 = vadd.f32 %v1516_v52, %v503_v58  ;;  %v671_v60 = vpop.f32.mrf.mxu1 }
  0xe7   : > { %752 = vst [vmem:[%s1529_s26 + $0x10] sm:$0xff] %v680_v57  ;;  %v672_v61 = vadd.f32 %v1521_v53, %v671_v60  ;;  %v1119_v62 = vpop.f32.mrf.mxu0  ;;  %v768_v7 = vadd.f32 %v680_v57, %v512_v55  ;;  %v789_v60 = vld [vmem:[%s1537_s21 + $0x38] sm:$0xff] }
  0xe8   : > { %734 = vst [vmem:[%s1525_s25] sm:$0xff] %v504_v59  ;;  %v515_v63 = vadd.f32 %v1119_v62, %v1516_v52  ;;  %v1139_v0 = vpop.f32.mrf.mxu1 }
  0xe9   : > { %750 = vst [vmem:[%s1529_s26] sm:$0xff] %v672_v61  ;;  %v766_v1 = vadd.f32 %v672_v61, %v504_v59  ;;  %v683_v3 = vadd.f32 %v1139_v0, %v1521_v53  ;;  %v506_v4 = vpop.f32.mrf.mxu0  ;;  %v800_v22 = vsub.f32 %v768_v7, %v784_v10 }
  0xea   : > { %737 = vst [vmem:[%s1525_s25 + $0x18] sm:$0xff] %v515_v63  ;;  %v507_v5 = vadd.f32 %v1516_v52, %v506_v4  ;;  %v674_v6 = vpop.f32.mrf.mxu1  ;;  %v790_v4 = vld [vmem:[%s1537_s21 + $0x40] sm:$0xff] }
  0xeb   : > { %753 = vst [vmem:[%s1529_s26 + $0x18] sm:$0xff] %v683_v3  ;;  %v675_v8 = vadd.f32 %v1521_v53, %v674_v6  ;;  %v1122_v9 = vpop.f32.mrf.mxu0  ;;  %v798_v11 = vsub.f32 %v766_v1, %v782_v2  ;;  %v769_v15 = vadd.f32 %v683_v3, %v515_v63  ;;  %v816_v37 = vmul.f32 %v800_v22, %v800_v22 }
  0xec   : > { %735 = vst [vmem:[%s1525_s25 + $0x8] sm:$0xff] %v507_v5  ;;  %v528_v13 = vadd.f32 %v1122_v9, %v1516_v52  ;;  %v1142_v14 = vpop.f32.mrf.mxu1 }
  0xed   : > { %751 = vst [vmem:[%s1529_s26 + $0x8] sm:$0xff] %v675_v8  ;;  %v767_v16 = vadd.f32 %v675_v8, %v507_v5  ;;  %v696_v17 = vadd.f32 %v1142_v14, %v1521_v53  ;;  %v519_v18 = vpop.f32.mrf.mxu0  ;;  %v814_v26 = vmul.f32 %v798_v11, %v798_v11  ;;  %v801_v30 = vsub.f32 %v769_v15, %v785_v19 }
  0xee   : > { %740 = vst [vmem:[%s1525_s25 + $0x30] sm:$0xff] %v528_v13  ;;  %v520_v20 = vadd.f32 %v1516_v52, %v519_v18  ;;  %v687_v21 = vpop.f32.mrf.mxu1 }
  0xef   : > { %v799_v23 = vsub.f32 %v767_v16, %v783_v12  ;;  %756 = vst [vmem:[%s1529_s26 + $0x30] sm:$0xff] %v696_v17  ;;  %v688_v24 = vadd.f32 %v1521_v53, %v687_v21  ;;  %v1123_v25 = vpop.f32.mrf.mxu0  ;;  %v772_v39 = vadd.f32 %v696_v17, %v528_v13  ;;  %v817_v46 = vmul.f32 %v801_v30, %v801_v30  ;;  %v791_v17 = vld [vmem:[%s1537_s21 + $0x48] sm:$0xff] }
  0xf0   : > { %738 = vst [vmem:[%s1525_s25 + $0x20] sm:$0xff] %v520_v20  ;;  %v531_v28 = vadd.f32 %v1123_v25, %v1516_v52  ;;  %v1143_v29 = vpop.f32.mrf.mxu1 }
  0xf1   : > { %v815_v31 = vmul.f32 %v799_v23, %v799_v23  ;;  %754 = vst [vmem:[%s1529_s26 + $0x20] sm:$0xff] %v688_v24  ;;  %v770_v32 = vadd.f32 %v688_v24, %v520_v20  ;;  %v699_v33 = vadd.f32 %v1143_v29, %v1521_v53  ;;  %v522_v34 = vpop.f32.mrf.mxu0  ;;  %v804_v57 = vsub.f32 %v772_v39, %v788_v42  ;;  %v792_v20 = vld [vmem:[%s1537_s21 + $0x50] sm:$0xff]  ;;  %v793_v29 = vld [vmem:[%s1537_s21 + $0x58] sm:$0xff] }
  0xf2   : > { %741 = vst [vmem:[%s1525_s25 + $0x38] sm:$0xff] %v531_v28  ;;  %v523_v35 = vadd.f32 %v1516_v52, %v522_v34  ;;  %v690_v36 = vpop.f32.mrf.mxu1 }
  0xf3   : > { %v830_v38 = vadd.f32 %v815_v31, %v814_v26  ;;  %v802_v40 = vsub.f32 %v770_v32, %v786_v27  ;;  %757 = vst [vmem:[%s1529_s26 + $0x38] sm:$0xff] %v699_v33  ;;  %v1126_v41 = vpop.f32.mrf.mxu0  ;;  %v691_v43 = vadd.f32 %v1521_v53, %v690_v36  ;;  %v773_v51 = vadd.f32 %v699_v33, %v531_v28 }
  0xf4   : > { %739 = vst [vmem:[%s1525_s25 + $0x28] sm:$0xff] %v523_v35  ;;  %v544_v44 = vadd.f32 %v1126_v41, %v1516_v52  ;;  %v1146_v45 = vpop.f32.mrf.mxu1  ;;  %v820_v11 = vmul.f32 %v804_v57, %v804_v57 }
  0xf5   : > { %v831_v47 = vadd.f32 %v830_v38, %v816_v37  ;;  %v712_v49 = vadd.f32 %v1146_v45, %v1521_v53  ;;  %v535_v50 = vpop.f32.mrf.mxu0  ;;  %755 = vst [vmem:[%s1529_s26 + $0x28] sm:$0xff] %v691_v43  ;;  %v771_v54 = vadd.f32 %v691_v43, %v523_v35  ;;  %v818_v58 = vmul.f32 %v802_v40, %v802_v40  ;;  %v794_v40 = vld [vmem:[%s1537_s21 + $0x60] sm:$0xff] }
  0xf6   : > { %744 = vst [vmem:[%s1525_s25 + $0x50] sm:$0xff] %v544_v44  ;;  %v536_v55 = vadd.f32 %v1516_v52, %v535_v50  ;;  %v703_v56 = vpop.f32.mrf.mxu1  ;;  %v805_v7 = vsub.f32 %v773_v51, %v789_v60  ;;  %v1629_v50 = vld [vmem:[%s1537_s21 + $0x70] sm:$0xff] }
  0xf7   : > { %v832_v59 = vadd.f32 %v831_v47, %v817_v46  ;;  %760 = vst [vmem:[%s1529_s26 + $0x50] sm:$0xff] %v712_v49  ;;  %v704_v61 = vadd.f32 %v1521_v53, %v703_v56  ;;  %v1127_v62 = vpop.f32.mrf.mxu0  ;;  %v803_v63 = vsub.f32 %v771_v54, %v787_v48  ;;  %v776_v15 = vadd.f32 %v712_v49, %v544_v44  ;;  %v795_v54 = vld [vmem:[%s1537_s21 + $0x68] sm:$0xff] }
  0xf8   : > { %742 = vst [vmem:[%s1525_s25 + $0x40] sm:$0xff] %v536_v55  ;;  %v547_v0 = vadd.f32 %v1127_v62, %v1516_v52  ;;  %v1147_v1 = vpop.f32.mrf.mxu1  ;;  %v821_v24 = vmul.f32 %v805_v7, %v805_v7 }
  0xf9   : > { %v833_v2 = vadd.f32 %v832_v59, %v818_v58  ;;  %758 = vst [vmem:[%s1529_s26 + $0x40] sm:$0xff] %v704_v61  ;;  %v774_v3 = vadd.f32 %v704_v61, %v536_v55  ;;  %v715_v5 = vadd.f32 %v1147_v1, %v1521_v53  ;;  %v538_v6 = vpop.f32.mrf.mxu0  ;;  %v819_v8 = vmul.f32 %v803_v63, %v803_v63 }
  0xfa   : > { %745 = vst [vmem:[%s1525_s25 + $0x58] sm:$0xff] %v547_v0  ;;  %v539_v9 = vadd.f32 %v1516_v52, %v538_v6  ;;  %v706_v10 = vpop.f32.mrf.mxu1  ;;  %v808_v33 = vsub.f32 %v776_v15, %v792_v20 }
  0xfb   : > { %761 = vst [vmem:[%s1529_s26 + $0x58] sm:$0xff] %v715_v5  ;;  %v707_v12 = vadd.f32 %v1521_v53, %v706_v10  ;;  %v1130_v13 = vpop.f32.mrf.mxu0  ;;  %v834_v14 = vadd.f32 %v833_v2, %v819_v8  ;;  %v806_v16 = vsub.f32 %v774_v3, %v790_v4  ;;  %v777_v26 = vadd.f32 %v715_v5, %v547_v0 }
  0xfc   : > { %743 = vst [vmem:[%s1525_s25 + $0x48] sm:$0xff] %v539_v9  ;;  %v560_v18 = vadd.f32 %v1130_v13, %v1516_v52  ;;  %v1150_v19 = vpop.f32.mrf.mxu1 }
  0xfd   : > { %759 = vst [vmem:[%s1529_s26 + $0x48] sm:$0xff] %v707_v12  ;;  %v775_v21 = vadd.f32 %v707_v12, %v539_v9  ;;  %v728_v22 = vadd.f32 %v1150_v19, %v1521_v53  ;;  %v551_v23 = vpop.f32.mrf.mxu0  ;;  %v835_v25 = vadd.f32 %v834_v14, %v820_v11  ;;  %v822_v34 = vmul.f32 %v806_v16, %v806_v16 }
  0xfe   : > { %748 = vst [vmem:[%s1525_s25 + $0x70] sm:$0xff] %v560_v18  ;;  %v552_v27 = vadd.f32 %v1516_v52, %v551_v23  ;;  %v719_v28 = vpop.f32.mrf.mxu1  ;;  %v809_v44 = vsub.f32 %v777_v26, %v793_v29 }
  0xff   : > { %v807_v30 = vsub.f32 %v775_v21, %v791_v17  ;;  %764 = vst [vmem:[%s1529_s26 + $0x70] sm:$0xff] %v728_v22  ;;  %v720_v31 = vadd.f32 %v1521_v53, %v719_v28  ;;  %v1131_v32 = vpop.f32.mrf.mxu0  ;;  %v836_v35 = vadd.f32 %v835_v25, %v821_v24  ;;  %v1626_v49 = vadd.f32 %v728_v22, %v560_v18 }
 0x100   : > { %746 = vst [vmem:[%s1525_s25 + $0x60] sm:$0xff] %v552_v27  ;;  %v563_v36 = vadd.f32 %v1131_v32, %v1516_v52  ;;  %v1151_v37 = vpop.f32.mrf.mxu1 }
 0x101   : > { %v823_v38 = vmul.f32 %v807_v30, %v807_v30  ;;  %762 = vst [vmem:[%s1529_s26 + $0x60] sm:$0xff] %v720_v31  ;;  %v778_v39 = vadd.f32 %v720_v31, %v552_v27  ;;  %v731_v41 = vadd.f32 %v1151_v37, %v1521_v53  ;;  %v554_v42 = vpop.f32.mrf.mxu0  ;;  %v837_v43 = vadd.f32 %v836_v35, %v822_v34 }
 0x102   : > { %749 = vst [vmem:[%s1525_s25 + $0x78] sm:$0xff] %v563_v36  ;;  %v555_v45 = vadd.f32 %v1516_v52, %v554_v42  ;;  %v722_v46 = vpop.f32.mrf.mxu1  ;;  %v824_v52 = vmul.f32 %v808_v33, %v808_v33 }
 0x103   : > { %765 = vst [vmem:[%s1529_s26 + $0x78] sm:$0xff] %v731_v41  ;;  %v723_v47 = vadd.f32 %v1521_v53, %v722_v46  ;;  %v838_v48 = vadd.f32 %v837_v43, %v823_v38  ;;  %v1631_v51 = vsub.f32 %v778_v39, %v794_v40 }
 0x104   : > { %747 = vst [vmem:[%s1525_s25 + $0x68] sm:$0xff] %v555_v45 }
 0x105   : > { %763 = vst [vmem:[%s1529_s26 + $0x68] sm:$0xff] %v723_v47  ;;  %v779_v53 = vadd.f32 %v723_v47, %v555_v45 }
 0x106   : > { %1220 = shalt.err (!%p1217_p3)
}
 0x107   : > { %s1221_s25 = scalar_lea.hbm %s1613_s14, 2048  ;;  %s1225_s0 = scalar_lea.hbm %s1739_s7, 4096 }
 0x108   : > { %p1222_p4 = scmp.ne.s32.totalorder %s1613_s14, %s1221_s25  ;;  %p1226_p9 = scmp.lt.s32.totalorder %s1613_s14, %s1739_s7 }
 0x109   : > { %p1227_p10 = scmp.lt.s32.totalorder %s1225_s0, %s1221_s25 }
 0x10a   : > { %p1223_p7 = pnand %p1222_p4, %p1420_p5 }
 0x10b   : > { %p1228_p11 = por %p1227_p10, %p1226_p9 }
 0x10c   : > { %p1224_p8 = pneg %p1223_p7 }
 0x10e   : > { %p1229_p12 = pnand %p1228_p11, %p1224_p8 }
 0x110   : > { %1232 = shalt.err (!%p1229_p12)
}
 0x111   : > { %s1326_s16 = smov 128   ;;  %s1327_s27 = smov 8   ;;  %v825_v55 = vmul.f32 %v809_v44, %v809_v44  ;;  %v839_v56 = vadd.f32 %v838_v48, %v824_v52  ;;  %v781_v57 = vadd.f32 %v731_v41, %v563_v36 }
 0x112   : > { %s1753_s2 = scalar_lea.sflag [#allocation3], %s1510_s28  ;;  %s1754_s3 = sand.u32 1, %s1401_s13  }
 0x113   : > { %1152 = dma.vmem_to_hbm [thread:$0]  (%p1420_p5), %s1615_s22, 2048, %s1613_s14, %s1753_s2, %s1326_s16, %s1326_s16, %s1327_s27  }
 0x114   : > { %s1664_s17 = scalar_lea.sflag [#allocation5], %s1754_s3  ;;  %s1233_s29 = scalar_lea.vmem %s1624_s24, 2048 }
 0x115   : > { %p1234_p13 = scmp.ne.s32.totalorder %s1624_s24, %s1233_s29  ;;  %s1328_s25 = smov [#allocation4]  }
 0x116   : > { %s1237_s26 = sshll.u32 %s1328_s25, 4  ;;  %s1238_s26 = int_to_ptr.vmem [resolvable:$false] %s1237_s26 }
 0x117   : > { %p1235_p0 = pnand %p1234_p13, %p1420_p5  ;;  %s1239_s0 = scalar_lea.vmem %s1238_s26, 4096 }
 0x118   : > { %p1240_p2 = scmp.lt.s32.totalorder %s1624_s24, %s1238_s26  ;;  %p1241_p3 = scmp.lt.s32.totalorder %s1239_s0, %s1233_s29 }
 0x119   : > { %p1236_p1 = pneg %p1235_p0 }
 0x11a   : > { %p1242_p4 = por %p1241_p3, %p1240_p2 }
 0x11c   : > { %p1243_p7 = pnand %p1242_p4, %p1236_p1 }
 0x11e   : > { %1246 = shalt.err (!%p1243_p7)
}
 0x11f   : > { %s1247_s13 = scalar_lea.hbm %s1622_s1, 2048  ;;  %s1251_s2 = scalar_lea.hbm %s1740_s8, 4096 }
 0x120   : > { %p1248_p8 = scmp.ne.s32.totalorder %s1622_s1, %s1247_s13  ;;  %p1252_p11 = scmp.lt.s32.totalorder %s1622_s1, %s1740_s8 }
 0x121   : > { %p1253_p12 = scmp.lt.s32.totalorder %s1251_s2, %s1247_s13 }
 0x122   : > { %p1249_p9 = pnand %p1248_p8, %p1420_p5 }
 0x123   : > { %p1254_p13 = por %p1253_p12, %p1252_p11 }
 0x124   : > { %p1250_p10 = pneg %p1249_p9 }
 0x126   : > { %p1255_p0 = pnand %p1254_p13, %p1250_p10 }
 0x128   : > { %1258 = shalt.err (!%p1255_p0)
}
 0x129   : > { %1153 = dma.vmem_to_hbm [thread:$0]  (%p1420_p5), %s1624_s24, 2048, %s1622_s1, %s1664_s17, %s1326_s16, %s1326_s16, %s1327_s27   ;;  %v811_v59 = vsub.f32 %v779_v53, %v795_v54  ;;  %v812_v60 = vsub.f32 %v1626_v49, %v1629_v50  ;;  %v826_v61 = vmul.f32 %v1631_v51, %v1631_v51  ;;  %v840_v62 = vadd.f32 %v839_v56, %v825_v55 }
 0x12a   : > { %v797_v58 = vld [vmem:[%s1537_s21 + $0x78] sm:$0xff]  ;;  %s375_s1 = scalar_lea.vmem [#allocation6], %s1510_s28  ;;  %s905_s27 = scalar_lea.hbm %s1741_s9, %s1434_s23 }
 0x12b   : > { %v827_v63 = vmul.f32 %v811_v59, %v811_v59  ;;  %v841_v0 = vadd.f32 %v840_v62, %v826_v61  ;;  %v813_v1 = vsub.f32 %v781_v57, %v797_v58  ;;  %v828_v2 = vmul.f32 %v812_v60, %v812_v60  ;;  %s907_s21 = sshll.u32 %s375_s1, 4  ;;  %s1329_s26 = smov [#allocation6]   ;;  %s908_s21 = int_to_ptr.vmem [resolvable:$true] %s907_s21 }
 0x12c   : > { %s1259_s29 = scalar_lea.vmem %s908_s21, 16  ;;  %s1263_s0 = sshll.u32 %s1329_s26, 4  ;;  %s1264_s0 = int_to_ptr.vmem [resolvable:$false] %s1263_s0 }
 0x12d   : > { %v842_v3 = vadd.f32 %v841_v0, %v827_v63  ;;  %v829_v4 = vmul.f32 %v813_v1, %v813_v1  ;;  %p1260_p1 = scmp.ne.s32.totalorder %s908_s21, %s1259_s29  ;;  %s1265_s13 = scalar_lea.vmem %s1264_s0, 32 }
 0x12e   : > { %p1266_p4 = scmp.lt.s32.totalorder %s908_s21, %s1264_s0  ;;  %p1267_p7 = scmp.lt.s32.totalorder %s1265_s13, %s1259_s29 }
 0x12f   : > { %v843_v5 = vadd.f32 %v842_v3, %v828_v2  ;;  %p1261_p2 = pnand %p1260_p1, %p1420_p5 }
 0x130   : > { %p1268_p8 = por %p1267_p7, %p1266_p4 }
 0x131   : > { %v844_v6 = vadd.f32 %v843_v5, %v829_v4  ;;  %p1262_p3 = pneg %p1261_p2 }
 0x133   : > { %v845_v7 = vrot.slane %v844_v6, 4  ;;  %p1269_p9 = pnand %p1268_p8, %p1262_p3 }
 0x135   : > { %v846_v8 = vadd.f32 %v845_v7, %v844_v6 }
 0x137   : > { %v847_v9 = vrot.slane %v846_v8, 2 }
 0x139   : > { %v848_v10 = vadd.f32 %v847_v9, %v846_v8 }
 0x13b   : > { %v849_v11 = vrot.slane %v848_v10, 1 }
 0x13d   : > { %v850_v12 = vadd.f32 %v849_v11, %v848_v10 }
 0x13f   : > { %851 = vst [vmem:[%s375_s1] sm:$0x1] %v850_v12 }
 0x140   : > { %1272 = shalt.err (!%p1269_p9)
}
 0x141   : > { %s1273_s28 = scalar_lea.hbm %s905_s27, 16  ;;  %s1277_s22 = scalar_lea.hbm %s1741_s9, 32 }
 0x142   : > { %p1274_p10 = scmp.ne.s32.totalorder %s905_s27, %s1273_s28  ;;  %p1278_p13 = scmp.lt.s32.totalorder %s905_s27, %s1741_s9 }
 0x143   : > { %p1279_p0 = scmp.lt.s32.totalorder %s1277_s22, %s1273_s28 }
 0x144   : > { %p1275_p11 = pnand %p1274_p10, %p1420_p5 }
 0x145   : > { %p1280_p1 = por %p1279_p0, %p1278_p13 }
 0x146   : > { %p1276_p12 = pneg %p1275_p11 }
 0x148   : > { %p1281_p2 = pnand %p1280_p1, %p1276_p12 }
 0x14a   : > { %1284 = shalt.err (!%p1281_p2)
}
 0x14b   : > { %1154 = dma.vmem_to_hbm [thread:$0]  (%p1420_p5), %s908_s21, 16, %s905_s27, %s1664_s17  }
 0x14c PF: > { %p1168_p3 = scmp.ge.s32.totalorder %s1323_s12, 2  ;;  %s919_s25 = sand.u32 1, %s1311_s30  }
 0x14d   : > { %s920_s1 = scalar_lea.sflag [#allocation3], %s919_s25 }
 0x14e   : > { %p1159_p4 = pnand %p1168_p3, %p1424_p6 }
 0x150   : > { %p1160_p7 = pneg %p1159_p4 }
 0x152   : > { %1302 = dma.done.wait (%p1160_p7), %s920_s1, 2048  }
 0x153   : > { %1304 = vsyncadd (%p1160_p7), %s920_s1, 4294965248  ;;  %s1755_s24 = sadd.s32 4294967294, %s1323_s12  }
 0x154   : > { %s928_s16 = sand.u32 1, %s1755_s24  }
 0x155   : > { %s929_s29 = scalar_lea.sflag [#allocation5], %s928_s16 }
 0x156   : > { %1306 = dma.done.wait (%p1160_p7), %s929_s29, 2064  }
 0x157   : > { %1308 = vsyncadd (%p1160_p7), %s929_s29, 4294965232  ;;  %p23_p5 = scmp.ge.s32.totalorder %s1405_s15, 4   ;;  %s1756_s30 = smov %s1315_s10 }
 0x158   : > { %s1757_s10 = smov %s1319_s11  ;;  %s1758_s11 = smov %s1418_s18 }
 0x159   : > { %s1759_s12 = smov %s1405_s15  ;;  %25 = sbr.rel (!%p23_p5) target bundleno = 10 (0xa), region = 121 }
 0x15e   :  { %942 = vsyncpa [#allocation3], 1 }
 0x15f   :  { %944 = vsyncpa [#allocation3 + $0x1], 1 }
 0x160   :  { %945 = vsyncpa [#allocation5], 1 }
 0x161   :  { %947 = vsyncpa [#allocation5 + $0x1], 1 }

</bundles_post_ra>
